<compile_context>
chip_gen: v7x
topology: tpu7x:2x2x1
jax: 0.10.0
libtpu: 0.0.40
codegen_flags: <defaults>
</compile_context>

<pallas_src>
import jax
import jax.numpy as jnp
from jax import lax
from jax.experimental import pallas as pl
from jax.experimental.pallas import tpu as pltpu


def _round_up(x, m):
    return ((x + m - 1) // m) * m


def _pick_hw_tile(hw, max_tile):
    """Largest multiple-of-8 divisor of hw that is <= max_tile (else hw)."""
    if hw <= max_tile:
        return hw
    for t in range(min(max_tile, hw), 7, -1):
        if hw % t == 0 and t % 8 == 0:
            return t
    return hw  # fallback: single tile (block dim equals full array dim)


def _stats_kernel(x_ref, w_ref, stats_ref):
    """Per-(image, hw-tile) partial BN statistics of the bias-free conv output.

    x_ref    : (tHW, Kpad)  im2col-packed activation tile (compute dtype).
    w_ref    : (Kpad, Cpad) K-folded weights (compute dtype).
    stats_ref: (2, Cpad) f32; row 0 = sum, row 1 = centered sum of squares.
    """
    acc = jnp.dot(x_ref[...], w_ref[...], preferred_element_type=jnp.float32)
    n_rows = acc.shape[0]
    s1 = jnp.sum(acc, axis=0, keepdims=True)                  # (1, Cpad)
    d = acc - s1 * (1.0 / n_rows)                             # centered
    s2c = jnp.sum(d * d, axis=0, keepdims=True)               # (1, Cpad)
    stats_ref[...] = jnp.concatenate([s1, s2c], axis=0)


def _apply_kernel(x_ref, w_ref, scale_ref, shift_ref, o_ref):
    """Recompute the conv tile (single K-folded matmul), fuse BN scale/shift + ReLU."""
    acc = jnp.dot(x_ref[...], w_ref[...], preferred_element_type=jnp.float32)
    y = jnp.maximum(acc * scale_ref[...] + shift_ref[...], 0.0)
    o_ref[...] = y.astype(o_ref.dtype)


def conv_bn_relu(x_nchw, w_oihw, conv_b, gamma, beta, *, eps=1e-5,
                 compute_dtype=jnp.bfloat16, out_dtype=jnp.bfloat16,
                 out_layout="NCHW", max_hw_tile=512):
    """Forward of ConvBNRelu (stride=1). Input NCHW float32.

    Note: under training-mode BatchNorm the Conv2d bias cancels exactly (it
    only shifts the per-channel mean), so `conv_b` does not affect the output;
    it is accepted for interface parity with the PyTorch module.
    """
    del conv_b  # cancels under training-mode BN normalization
    N, Cin, H, W = x_nchw.shape
    Cout = w_oihw.shape[0]
    HW = H * W
    M = N * HW
    Cpad = _round_up(Cout, 128)          # lane-dense output channels
    K = 9 * Cin                          # folded tap*Cin contraction
    Kpad = _round_up(K, 128)             # lane-dense LHS / full MXU depth
    tHW = _pick_hw_tile(HW, max_hw_tile)
    nT = HW // tHW

    # ---- layout plumbing (pure XLA): K-folded im2col pack + weight repack ---
    x = jnp.transpose(x_nchw, (0, 2, 3, 1))                              # NHWC
    xp = jnp.pad(x, ((0, 0), (1, 1), (1, 1), (0, 0)))                    # spatial pad
    taps = [xp[:, dy:dy + H, dx:dx + W, :] for dy in range(3) for dx in range(3)]
    xcol = jnp.concatenate(taps, axis=-1).reshape(N, HW, K)
    xcol = jnp.pad(xcol, ((0, 0), (0, 0), (0, Kpad - K))).astype(compute_dtype)

    w = jnp.transpose(w_oihw, (2, 3, 1, 0)).reshape(K, Cout)             # (dy,dx,cin) x cout
    w = jnp.pad(w, ((0, Kpad - K), (0, Cpad - Cout))).astype(compute_dtype)

    cparams = pltpu.CompilerParams(
        dimension_semantics=("parallel", "parallel"),
        vmem_limit_bytes=48 * 1024 * 1024)   # > default 32MiB, headroom vs v7x 64MiB

    # ---- pass 1: per-(image, hw-tile) partial (sum, centered sumsq) ---------
    stats = pl.pallas_call(
        _stats_kernel,
        out_shape=jax.ShapeDtypeStruct((N, nT, 2, Cpad), jnp.float32),
        grid=(N, nT),
        in_specs=[
            pl.BlockSpec((pl.Squeezed(), tHW, Kpad), lambda n, t: (n, t, 0)),
            pl.BlockSpec((Kpad, Cpad), lambda n, t: (0, 0)),
        ],
        out_specs=pl.BlockSpec((pl.Squeezed(), pl.Squeezed(), 2, Cpad),
                               lambda n, t: (n, t, 0, 0)),
        compiler_params=cparams,
    )(xcol, w)

    # ---- tiny wrapper-side reduction: batch mean/var -> fused scale/shift ---
    s1 = stats[:, :, 0, :].reshape(N * nT, Cpad)        # per-tile sums
    s2c = stats[:, :, 1, :].reshape(N * nT, Cpad)       # per-tile centered sumsq
    mean = jnp.sum(s1, axis=0) / M
    mu_t = s1 / tHW
    var = (jnp.sum(s2c, axis=0)
           + tHW * jnp.sum((mu_t - mean) ** 2, axis=0)) / M          # biased var
    gamma_p = jnp.pad(gamma.astype(jnp.float32), (0, Cpad - Cout))
    beta_p = jnp.pad(beta.astype(jnp.float32), (0, Cpad - Cout))
    rstd = lax.rsqrt(var + eps)
    scale_v = gamma_p * rstd
    shift_v = beta_p - mean * scale_v
    scale = scale_v.reshape(1, Cpad)
    shift = shift_v.reshape(1, Cpad)

    # ---- pass 2: conv recompute (one matmul per tile) fused with BN + ReLU --
    out = pl.pallas_call(
        _apply_kernel,
        out_shape=jax.ShapeDtypeStruct((N, HW, Cpad), out_dtype),
        grid=(N, nT),
        in_specs=[
            pl.BlockSpec((pl.Squeezed(), tHW, Kpad), lambda n, t: (n, t, 0)),
            pl.BlockSpec((Kpad, Cpad), lambda n, t: (0, 0)),
            pl.BlockSpec((1, Cpad), lambda n, t: (0, 0)),
            pl.BlockSpec((1, Cpad), lambda n, t: (0, 0)),
        ],
        out_specs=pl.BlockSpec((pl.Squeezed(), tHW, Cpad), lambda n, t: (n, t, 0)),
        compiler_params=cparams,
    )(xcol, w, scale, shift)

    # ---- layout back to the requested format (NCHW only for module parity) --
    out = out.reshape(N, H, W, Cpad)[..., :Cout]
    if out_layout == "NHWC":
        return out
    return jnp.transpose(out, (0, 3, 1, 2))


def _reference(x_nchw, w_oihw, conv_b, gamma, beta, eps=1e-5):
    """Pure-JAX reference matching PyTorch ConvBNRelu (training-mode BN)."""
    y = lax.conv_general_dilated(x_nchw, w_oihw, window_strides=(1, 1),
                                 padding=((1, 1), (1, 1)),
                                 dimension_numbers=("NCHW", "OIHW", "NCHW"))
    y = y + conv_b.reshape(1, -1, 1, 1)
    mean = jnp.mean(y, axis=(0, 2, 3), keepdims=True)
    var = jnp.var(y, axis=(0, 2, 3), keepdims=True)
    yn = (y - mean) / jnp.sqrt(var + eps)
    yn = yn * gamma.reshape(1, -1, 1, 1) + beta.reshape(1, -1, 1, 1)
    return jnp.maximum(yn, 0.0)


if __name__ == "__main__":
    N, Cin, Cout, H, W = 2, 4, 8, 16, 16

    key = jax.random.PRNGKey(0)
    k1, k2, k3, k4, k5 = jax.random.split(key, 5)
    x = jax.random.normal(k1, (N, Cin, H, W), jnp.float32)
    w = 0.1 * jax.random.normal(k2, (Cout, Cin, 3, 3), jnp.float32)   # Conv2d weight
    conv_b = 0.1 * jax.random.normal(k3, (Cout,), jnp.float32)        # Conv2d bias
    gamma = 1.0 + 0.1 * jax.random.normal(k4, (Cout,), jnp.float32)   # BN weight
    beta = 0.1 * jax.random.normal(k5, (Cout,), jnp.float32)          # BN bias

    ref = _reference(x, w, conv_b, gamma, beta)

    # f32 compute/output path with small HW tiles: tight check of the kernel
    # structure and the multi-tile two-level BN-statistics combine.
    out_f32 = jax.block_until_ready(conv_bn_relu(
        x, w, conv_b, gamma, beta,
        compute_dtype=jnp.float32, out_dtype=jnp.float32, max_hw_tile=64))
    assert out_f32.shape == (N, Cout, H, W), out_f32.shape
    assert jnp.allclose(out_f32, ref, rtol=5e-3, atol=5e-3), \
        float(jnp.max(jnp.abs(out_f32 - ref)))

    # Default fast path: bf16 MXU inputs, bf16 lane-dense output.
    out_bf16 = jax.block_until_ready(conv_bn_relu(x, w, conv_b, gamma, beta))
    assert out_bf16.shape == (N, Cout, H, W), out_bf16.shape
    assert out_bf16.dtype == jnp.bfloat16, out_bf16.dtype
    assert jnp.allclose(out_bf16.astype(jnp.float32), ref, rtol=5e-2, atol=5e-2), \
        float(jnp.max(jnp.abs(out_bf16.astype(jnp.float32) - ref)))

    print("KERNEL_OK")
</pallas_src>

<mosaic_0001>
module attributes {stable_mosaic.version = 11 : i64} {
  func.func @_stats_kernel(%arg0: i32, %arg1: i32, %arg2: memref<1x64x128xf32, #tpu.memory_space<vmem>>, %arg3: memref<128x128xf32, #tpu.memory_space<vmem>>, %arg4: memref<1x1x2x128xf32, #tpu.memory_space<vmem>>) attributes {dimension_semantics = [#tpu.dimension_semantics<parallel>, #tpu.dimension_semantics<parallel>], iteration_bounds = array<i64: 2, 4>, scalar_prefetch = 0 : i64, scratch_operands = 0 : i64, tpu.core_type = #tpu.core_type<tc>, window_params = [{transform_indices = @transform_0, window_bounds = array<i64: 1, 64, 128>}, {pipeline_mode = #tpu.pipeline_mode<synchronous>, transform_indices = @transform_1, window_bounds = array<i64: 128, 128>}, {transform_indices = @transform_2, window_bounds = array<i64: 1, 1, 2, 128>}]} {
    %c0 = arith.constant 0 : index
    %c0_0 = arith.constant 0 : index
    %c0_1 = arith.constant 0 : index
    %0 = vector.load %arg2[%c0, %c0_0, %c0_1] : memref<1x64x128xf32, #tpu.memory_space<vmem>>, vector<1x64x128xf32>
    %1 = vector.shape_cast %0 : vector<1x64x128xf32> to vector<64x128xf32>
    %c0_2 = arith.constant 0 : index
    %c0_3 = arith.constant 0 : index
    %2 = vector.load %arg3[%c0_2, %c0_3] : memref<128x128xf32, #tpu.memory_space<vmem>>, vector<128x128xf32>
    %cst = arith.constant dense<0.000000e+00> : vector<64x128xf32>
    %3 = tpu.matmul %1, %2, %cst {dimension_numbers = #tpu.dot_dimension_numbers<[1], [0], [0], [1], [0, 0, 1, 1], [], []>} : vector<64x128xf32>, vector<128x128xf32>, vector<64x128xf32> -> vector<64x128xf32>
    %cst_4 = arith.constant dense<0.000000e+00> : vector<128xf32>
    %4 = vector.multi_reduction <add>, %3, %cst_4 [0] : vector<64x128xf32> to vector<128xf32>
    %5 = vector.shape_cast %4 : vector<128xf32> to vector<1x128xf32>
    %cst_5 = arith.constant 1.562500e-02 : f32
    %6 = vector.broadcast %cst_5 : f32 to vector<1x128xf32>
    %7 = arith.mulf %5, %6 : vector<1x128xf32>
    %8 = vector.broadcast %7 : vector<1x128xf32> to vector<64x128xf32>
    %9 = arith.subf %3, %8 : vector<64x128xf32>
    %10 = arith.mulf %9, %9 : vector<64x128xf32>
    %cst_6 = arith.constant dense<0.000000e+00> : vector<128xf32>
    %11 = vector.multi_reduction <add>, %10, %cst_6 [0] : vector<64x128xf32> to vector<128xf32>
    %12 = vector.shape_cast %11 : vector<128xf32> to vector<1x128xf32>
    %13 = tpu.concatenate %5, %12 in 0 : vector<1x128xf32>, vector<1x128xf32> -> vector<2x128xf32>
    %c0_7 = arith.constant 0 : index
    %c0_8 = arith.constant 0 : index
    %c0_9 = arith.constant 0 : index
    %c0_10 = arith.constant 0 : index
    %14 = vector.load %arg4[%c0_7, %c0_8, %c0_9, %c0_10] : memref<1x1x2x128xf32, #tpu.memory_space<vmem>>, vector<1x1x2x128xf32>
    %15 = vector.shape_cast %14 : vector<1x1x2x128xf32> to vector<2x128xf32>
    %16 = vector.shape_cast %13 : vector<2x128xf32> to vector<1x1x2x128xf32>
    tpu.vector_store %arg4[%c0_7, %c0_8, %c0_9, %c0_10], %16 {strides = array<i32>} : memref<1x1x2x128xf32, #tpu.memory_space<vmem>>, vector<1x1x2x128xf32>,
    return
  }
  func.func @transform_0(%arg0: i32, %arg1: i32) -> (i32, i32, i32) {
    %c0_i32 = arith.constant 0 : i32
    %c0_i32_0 = arith.constant 0 : i32
    return %arg0, %arg1, %c0_i32 : i32, i32, i32
  }
  func.func @transform_1(%arg0: i32, %arg1: i32) -> (i32, i32) {
    %c0_i32 = arith.constant 0 : i32
    %c0_i32_0 = arith.constant 0 : i32
    %c0_i32_1 = arith.constant 0 : i32
    return %c0_i32, %c0_i32_0 : i32, i32
  }
  func.func @transform_2(%arg0: i32, %arg1: i32) -> (i32, i32, i32, i32) {
    %c0_i32 = arith.constant 0 : i32
    %c0_i32_0 = arith.constant 0 : i32
    %c0_i32_1 = arith.constant 0 : i32
    return %arg0, %arg1, %c0_i32, %c0_i32_0 : i32, i32, i32, i32
  }
}

</mosaic_0001>

<bundles_post_ra>
// kernel: tpu_custom_call.1
= control target key start
LH: loop header
LB: loop body
LE: loop exit
PB: predicated region body
PF: predicated region fallthrough
CT: control target
= control target key end

     0   :  { %s1148_s0 = inlined_call_operand.hbm [shape: f32[2,256,128], index: 0, kind: input, shape index: {}]   ;;  %s1149_s1 = inlined_call_operand.hbm [shape: f32[128,128], index: 1, kind: input, shape index: {}]   ;;  %s1150_s2 = inlined_call_operand.hbm [shape: f32[2,4,2,128], index: 2, kind: output, shape index: {}]  }
   0x1   :  { %1160 = sst [smem:[#allocation14_spill]] %s1149_s1 }
   0x2   :  { %7 = vsyncpa [#allocation3], 0 }
   0x3   :  { %9 = vsyncpa [#allocation3 + $0x1], 0 }
   0x4   :  { %10 = vsyncpa [#allocation6], 0 }
   0x5   :  { %11 = vsyncpa [#allocation4], 0 }
   0x6   :  { %13 = vsyncpa [#allocation4 + $0x1], 0  ;;  %s890_s9 = smov 0   ;;  %s892_s10 = smov 0  }
   0x7   :  { %s894_s11 = smov 0   ;;  %s896_s12 = smov 0  }
   0x8   :  { %s898_s13 = smov 0   ;;  %s900_s14 = smov 0  }
   0x9   :  { %s902_s15 = smov 0   ;;  %s904_s16 = smov 0  }
   0xa LB: > { %1161 = sst [smem:[#allocation11_spill]] %s860_s14  ;;  %s483_s17 = sadd.s32 4294967295, %s868_s16   ;;  %s868_s16 = sphi %s904_s16, %s19_s16   ;;  %s864_s15 = sphi %s902_s15, %s1188_s15   ;;  %s860_s14 = sphi %s900_s14, %s1182_s14   ;;  %s856_s13 = sphi %s898_s13, %s1187_s13   ;;  %s852_s12 = sphi %s896_s12, %s1181_s12   ;;  %s848_s11 = sphi %s894_s11, %s1186_s11   ;;  %s844_s10 = sphi %s892_s10, %s1185_s10   ;;  %s840_s9 = sphi %s890_s9, %s1184_s9  }
   0xb   : > { %s484_s18 = sadd.s32 4294967294, %s868_s16   ;;  %p53_p0 = scmp.ne.s32.totalorder %s844_s10, %s840_s9 }
   0xc   : > { %p934_p1 = scmp.eq.s32.totalorder %s483_s17, 0  ;;  %p938_p2 = scmp.eq.s32.totalorder %s483_s17, 7 }
   0xd   : > { %p106_p3 = scmp.eq.s32.totalorder %s484_s18, 7  ;;  %p485_p5 = scmp.ge.s32.totalorder %s868_s16, 1 }
   0xe   : > { %s1162_s19 = scalar_select %p934_p1, 1, 0 }
   0xf   : > { %s1163_s20 = scalar_select %p938_p2, 1, 0 }
  0x10   : > { %p944_p4 = por %p934_p1, %p53_p0  ;;  %p949_p6 = por %p106_p3, %p53_p0 }
  0x11   : > { %p113_p7 = scmp.lt.s32.totalorder %s868_s16, 9  ;;  %s870_s24 = smov [#allocation5]  }
  0x12   : > { %s1164_s21 = scalar_select %p944_p4, 1, 0 }
  0x13   : > { %s1165_s22 = scalar_select %p949_p6, 1, 0 }
  0x14   : > { %p954_p8 = pnand %p485_p5, %p113_p7  ;;  %s125_s25 = sshll.u32 %s870_s24, 4  ;;  %s126_s25 = int_to_ptr.vmem [resolvable:$true] %s125_s25 }
  0x15   : > { %s1168_s1 = sld [smem:[#allocation14_spill]] }
  0x16   : > { %s1166_s23 = scalar_select %p954_p8, 1, 0 }
  0x17   : > { %p625_p9 = pneg %p954_p8 }
  0x19   : > { %p962_p10 = pnand %p625_p9, %p934_p1 }
  0x1b   : > { %s708_s29 = scalar_lea.hbm %s1168_s1, 2048  ;;  %p710_p12 = pneg %p962_p10 }
  0x1c   : > { %p709_p11 = scmp.ne.s32.totalorder %s1168_s1, %s708_s29  ;;  %p715_p3 = scmp.lt.u32.totalorder %s708_s29, %s1168_s1 }
  0x1e   : > { %p711_p13 = pnand %p710_p12, %p709_p11 }
  0x20   : > { %p712_p0 = pneg %p711_p13 }
  0x22   : > { %p717_p5 = pnand %p715_p3, %p712_p0 }
  0x24   : > { %720 = shalt.err (!%p717_p5)
}
  0x25   : > { %s721_s6 = scalar_lea.vmem %s126_s25, 2048  ;;  %p729_p1 = scmp.lt.s32.totalorder %s126_s25, %s126_s25 }
  0x26   : > { %p722_p7 = scmp.ne.s32.totalorder %s126_s25, %s721_s6  ;;  %p730_p4 = scmp.lt.s32.totalorder %s721_s6, %s721_s6 }
  0x28   : > { %p724_p9 = pnand %p722_p7, %p710_p12  ;;  %p731_p8 = por %p730_p4, %p729_p1 }
  0x2a   : > { %p725_p6 = pneg %p724_p9 }
  0x2c   : > { %p732_p2 = pnand %p731_p8, %p725_p6 }
  0x2e   : > { %735 = shalt.err (!%p732_p2)
}
  0x2f   : > { %s1155_s7 = smov 128   ;;  %s1156_s8 = smov 8  }
  0x30   : > { %628 = dma.hbm_to_vmem [thread:$0]  (!%p962_p10), %s1168_s1, 2048, %s126_s25, [#allocation6], %s1155_s7, %s1155_s7, %s1156_s8  }
  0x31   : > { %s28_s24 = sadd.s32 1, %s860_s14  ;;  %s31_s27 = sadd.s32 1, %s864_s15 }
  0x32   : > { %p29_p1 = scmp.ge.s32.totalorder %s28_s24, 4  ;;  %s40_s28 = sadd.s32 1, %s848_s11 }
  0x33   : > { %p47_p2 = scmp.ne.s32.totalorder %s848_s11, %s844_s10  ;;  %p48_p4 = scmp.eq.s32.totalorder %s868_s16, 0 }
  0x34   : > { %s1190_s24 = smov (%p29_p1, %s28_s24), 0  ;;  %s1192_s27 = smov (!%p29_p1, %s31_s27), %s864_s15 }
  0x35   : > { %1169 = sst [smem:[#allocation12_spill]] %s1190_s24  ;;  %s36_s26 = ssub.s32 %s860_s14, %s1190_s24 }
  0x36   : > { %p33_p6 = scmp.ge.s32.totalorder %s1192_s27, 2  ;;  %p1170_p8 = scmp.ne.s32.totalorder %s1163_s20, 0 }
  0x37   : > { %p1002_p10 = por %p48_p4, %p47_p2  ;;  %p638_p12 = scmp.lt.s32.totalorder %s868_s16, 8 }
  0x38   : > { %p998_p11 = por %p1170_p8, %p47_p2  ;;  %s1194_s27 = smov (%p33_p6, %s1192_s27), 0 }
  0x39   : > { %1173 = sst [smem:[#allocation13_spill]] %s1194_s27  ;;  %s139_s30 = sand.u32 1, %s848_s11  }
  0x3a   : > { %s489_s3 = sshll.u32 %s860_s14, 3  ;;  %s35_s4 = ssub.s32 %s864_s15, %s1194_s27 }
  0x3b   : > { %s37_s5 = sor.u32 %s36_s26, %s35_s4  ;;  %s488_s6 = sshll.u32 %s139_s30, 6 }
  0x3c   : > { %p38_p13 = scmp.eq.s32.totalorder %s37_s5, 0  ;;  %s490_s20 = sshll.u32 %s864_s15, 5 }
  0x3d   : > { %s143_s17 = scalar_lea.vmem [#allocation2], %s488_s6  ;;  %s149_s8 = sadd.s32 %s490_s20, %s489_s3 }
  0x3e   : > { %s152_s18 = sshll.u32 %s143_s17, 4  ;;  %s491_s1 = sshll.u32 %s149_s8, 7  ;;  %s1017_s18 = int_to_ptr.vmem [resolvable:$true] %s152_s18 }
  0x3f   : > { %s1015_s7 = scalar_select %p38_p13, %s848_s11, %s40_s28  }
  0x40   : > { %p1023_p0 = pnand %p638_p12, %p1002_p10  ;;  %s1030_s26 = scalar_lea.hbm %s1148_s0, %s491_s1 }
  0x41   : > { %s1032_s28 = scalar_lea.sflag [#allocation3], %s139_s30  ;;  %s736_s8 = scalar_lea.hbm %s1030_s26, 1024 }
  0x42   : > { %p737_p3 = scmp.ne.s32.totalorder %s1030_s26, %s736_s8  ;;  %p738_p5 = pneg %p1023_p0 }
  0x43   : > { %s741_s27 = scalar_lea.hbm %s1148_s0, 8192  ;;  %p742_p1 = scmp.lt.u32.totalorder %s1030_s26, %s1148_s0 }
  0x44   : > { %p739_p7 = pnand %p738_p5, %p737_p3  ;;  %p743_p2 = scmp.lt.u32.totalorder %s741_s27, %s736_s8 }
  0x45   : > { %p745_p6 = scmp.lt.u32.totalorder %s736_s8, %s1030_s26 }
  0x46   : > { %p740_p9 = pneg %p739_p7  ;;  %p744_p4 = por %p743_p2, %p742_p1 }
  0x48   : > { %p746_p8 = por %p745_p6, %p744_p4 }
  0x4a   : > { %p747_p10 = pnand %p746_p8, %p740_p9 }
  0x4c   : > { %750 = shalt.err (!%p747_p10)
}
  0x4d   : > { %s751_s30 = scalar_lea.vmem %s1017_s18, 1024  ;;  %s873_s4 = smov [#allocation2]  }
  0x4e   : > { %p752_p12 = scmp.ne.s32.totalorder %s1017_s18, %s751_s30  ;;  %s756_s5 = sshll.u32 %s873_s4, 4  ;;  %s757_s5 = int_to_ptr.vmem [resolvable:$false] %s756_s5 }
  0x4f   : > { %s758_s6 = scalar_lea.vmem %s757_s5, 2048  ;;  %p759_p7 = scmp.lt.s32.totalorder %s1017_s18, %s757_s5 }
  0x50   : > { %p754_p13 = pnand %p752_p12, %p738_p5  ;;  %p760_p1 = scmp.lt.s32.totalorder %s758_s6, %s751_s30 }
  0x52   : > { %p755_p3 = pneg %p754_p13  ;;  %p761_p2 = por %p760_p1, %p759_p7 }
  0x54   : > { %p762_p4 = pnand %p761_p2, %p755_p3 }
  0x56   : > { %765 = shalt.err (!%p762_p4)
}
  0x57   : > { %s1175_s20 = smov 8   ;;  %s1176_s17 = smov 128  }
  0x58   : > { %632 = dma.hbm_to_vmem [thread:$0]  (!%p1023_p0), %s1030_s26, 1024, %s1017_s18, %s1032_s28, %s1176_s17, %s1176_s17, %s1175_s20  }
  0x59   : > { %p1177_p5 = scmp.ne.s32.totalorder %s1166_s23, 0 }
  0x5a   : > { %s1066_s8 = sand.u32 (!%p1177_p5), 1, %s844_s10   ;;  %p1178_p9 = scmp.ne.s32.totalorder (!%p1177_p5), %s1164_s21, 0 }
  0x5b   : > { %164 = sbr.rel (%p1177_p5) target bundleno = 425 (0x1a9), region = 28  ;;  %s493_s25 = sshll.u32 (!%p1177_p5), %s1066_s8, 6 }
  0x5c   : > { %s167_s14 = scalar_lea.sflag (!%p1177_p5), [#allocation3], %s1066_s8  ;;  %s1070_s27 = scalar_lea.vmem (!%p1177_p5), [#allocation2], %s493_s25 }
  0x62   : > { %827 = dma.done.wait (%p1178_p9), %s167_s14, 1024  }
  0x63   : > { %829 = vsyncadd (%p1178_p9), %s167_s14, 4294966272  ;;  %p1179_p0 = scmp.ne.s32.totalorder %s1162_s19, 0 }
  0x65   : > { %831 = dma.done.wait (%p1179_p0), [#allocation6], 2048  }
  0x66   : > { %833 = vsyncadd (%p1179_p0), [#allocation6], 4294965248  ;;  %v204_v0 = vld [vmem:[#allocation5] sm:$0xff]  ;;  %v205_v1 = vld [vmem:[#allocation5 + $0x8] sm:$0xff]  ;;  %s495_s19 = sshll.u32 %s1066_s8, 1  ;;  %s497_s21 = sshll.u32 %s856_s13, 2 }
  0x67   : > { %v206_v2 = vld [vmem:[#allocation5 + $0x10] sm:$0xff]  ;;  %v569_v3 = vpack.c.bf16 %v205_v1, %v204_v0  ;;  %v207_v4 = vld [vmem:[#allocation5 + $0x18] sm:$0xff]  ;;  %v208_v6 = vld [vmem:[#allocation5 + $0x20] sm:$0xff]  ;;  %s383_s23 = sadd.s32 %s852_s12, %s497_s21  ;;  %s194_s18 = scalar_lea.vmem [#allocation7], %s495_s19  ;;  %vm368_vm0 = vcmask 1040384  }
  0x68   : > { %v573_v5 = vpack.c.bf16 %v207_v4, %v206_v2  ;;  %v209_v7 = vld [vmem:[#allocation5 + $0x28] sm:$0xff]  ;;  %v196_v9 = vld [vmem:[%s1070_s27] sm:$0xff]  ;;  %v210_v10 = vld [vmem:[#allocation5 + $0x30] sm:$0xff]  ;;  %s498_s24 = sshll.u32 %s383_s23, 5  ;;  %s387_s26 = sshll.u32 %s194_s18, 4  ;;  %s1096_s26 = int_to_ptr.vmem [resolvable:$true] %s387_s26 }
  0x69   : > { %570 = vmatprep.subr.bf16.mxu0 %v569_v3  ;;  %601 = vmatprep.subr.bf16.mxu1 %v569_v3  ;;  %v577_v8 = vpack.c.bf16 %v209_v7, %v208_v6  ;;  %v211_v11 = vld [vmem:[#allocation5 + $0x38] sm:$0xff]  ;;  %v200_v12 = vld [vmem:[%s1070_s27 + $0x20] sm:$0xff]  ;;  %v213_v15 = vld [vmem:[#allocation5 + $0x48] sm:$0xff]  ;;  %s1094_s3 = scalar_lea.hbm %s1150_s2, %s498_s24  ;;  %s372_s12 = scalar_lea.sflag [#allocation4], %s1066_s8 }
  0x6a   : > { %572 = vmatpush3.bf16.msra.mxu0 %v569_v3  ;;  %609 = vmatpush3.bf16.msra.mxu1 %v569_v3  ;;  %v581_v13 = vpack.c.bf16 %v211_v11, %v210_v10  ;;  %v212_v14 = vld [vmem:[#allocation5 + $0x40] sm:$0xff]  ;;  %v214_v17 = vld [vmem:[#allocation5 + $0x50] sm:$0xff]  ;;  %v215_v18 = vld [vmem:[#allocation5 + $0x58] sm:$0xff]  ;;  %s766_s13 = scalar_lea.vmem %s1096_s26, 32  ;;  %s874_s30 = smov [#allocation7]  }
  0x6b   : > { %574 = vmatprep.subr.bf16.mxu0 %v573_v5  ;;  %602 = vmatprep.subr.bf16.mxu1 %v573_v5  ;;  %v585_v16 = vpack.c.bf16 %v213_v15, %v212_v14  ;;  %v589_v19 = vpack.c.bf16 %v215_v18, %v214_v17  ;;  %v216_v20 = vld [vmem:[#allocation5 + $0x60] sm:$0xff]  ;;  %v217_v21 = vld [vmem:[#allocation5 + $0x68] sm:$0xff]  ;;  %v218_v23 = vld [vmem:[#allocation5 + $0x70] sm:$0xff]  ;;  %p767_p6 = scmp.ne.s32.totalorder %s1096_s26, %s766_s13  ;;  %s770_s4 = sshll.u32 %s874_s30, 4  ;;  %s771_s4 = int_to_ptr.vmem [resolvable:$false] %s770_s4 }
  0x6c   : > { %557 = vmatprep.mubr.f32.mxu0 %v196_v9  ;;  %563 = vmatprep.mubr.f32.mxu1 %v200_v12  ;;  %v593_v22 = vpack.c.bf16 %v217_v21, %v216_v20  ;;  %v219_v24 = vld [vmem:[#allocation5 + $0x78] sm:$0xff]  ;;  %v197_v26 = vld [vmem:[%s1070_s27 + $0x8] sm:$0xff]  ;;  %v198_v28 = vld [vmem:[%s1070_s27 + $0x10] sm:$0xff]  ;;  %s772_s5 = scalar_lea.vmem %s771_s4, 64  ;;  %p773_p12 = scmp.lt.s32.totalorder %s1096_s26, %s771_s4 }
  0x6d   : > { %v597_v25 = vpack.c.bf16 %v219_v24, %v218_v23  ;;  %v201_v27 = vld [vmem:[%s1070_s27 + $0x28] sm:$0xff]  ;;  %v202_v29 = vld [vmem:[%s1070_s27 + $0x30] sm:$0xff]  ;;  %v199_v30 = vld [vmem:[%s1070_s27 + $0x18] sm:$0xff]  ;;  %p768_p8 = pnand %p767_p6, %p998_p11  ;;  %p774_p13 = scmp.lt.s32.totalorder %s772_s5, %s766_s13 }
  0x6e   : > { %576 = vmatpush3.bf16.msra.mxu0 %v573_v5  ;;  %610 = vmatpush3.bf16.msra.mxu1 %v573_v5  ;;  %v203_v31 = vld [vmem:[%s1070_s27 + $0x38] sm:$0xff] }
  0x6f   : > { %578 = vmatprep.subr.bf16.mxu0 %v577_v8  ;;  %603 = vmatprep.subr.bf16.mxu1 %v577_v8  ;;  %p769_p10 = pneg %p768_p8  ;;  %p775_p3 = por %p774_p13, %p773_p12 }
  0x71   : > { %p776_p7 = pnand %p775_p3, %p769_p10 }
  0x72   : > { %580 = vmatpush3.bf16.msra.mxu0 %v577_v8  ;;  %611 = vmatpush3.bf16.msra.mxu1 %v577_v8 }
  0x73   : > { %582 = vmatprep.subr.bf16.mxu0 %v581_v13  ;;  %604 = vmatprep.subr.bf16.mxu1 %v581_v13 }
  0x76   : > { %584 = vmatpush3.bf16.msra.mxu0 %v581_v13  ;;  %612 = vmatpush3.bf16.msra.mxu1 %v581_v13 }
  0x77   : > { %586 = vmatprep.subr.bf16.mxu0 %v585_v16  ;;  %605 = vmatprep.subr.bf16.mxu1 %v585_v16 }
  0x7a   : > { %588 = vmatpush3.bf16.msra.mxu0 %v585_v16  ;;  %613 = vmatpush3.bf16.msra.mxu1 %v585_v16 }
  0x7b   : > { %590 = vmatprep.subr.bf16.mxu0 %v589_v19  ;;  %606 = vmatprep.subr.bf16.mxu1 %v589_v19 }
  0x7e   : > { %592 = vmatpush3.bf16.msra.mxu0 %v589_v19  ;;  %614 = vmatpush3.bf16.msra.mxu1 %v589_v19 }
  0x7f   : > { %594 = vmatprep.subr.bf16.mxu0 %v593_v22  ;;  %607 = vmatprep.subr.bf16.mxu1 %v593_v22 }
  0x82   : > { %596 = vmatpush3.bf16.msra.mxu0 %v593_v22  ;;  %615 = vmatpush3.bf16.msra.mxu1 %v593_v22 }
  0x83   : > { %598 = vmatprep.subr.bf16.mxu0 %v597_v25  ;;  %608 = vmatprep.subr.bf16.mxu1 %v597_v25 }
  0x86   : > { %600 = vmatpush3.bf16.msra.mxu0 %v597_v25  ;;  %616 = vmatpush3.bf16.msra.mxu1 %v597_v25 }
  0x89   : > { %558 = vmatmul.mubr.f32.vlgmr.msra.gmra.mrb[0].mxu0 %v197_v26  ;;  %564 = vmatmul.mubr.f32.vlgmr.msra.gmra.mrb[0].mxu1 %v201_v27 }
  0x8a   : > { %560 = vmatprep.mubr.f32.mxu0 %v198_v28  ;;  %566 = vmatprep.mubr.f32.mxu1 %v202_v29 }
  0x8d   : > { %561 = vmatmul.mubr.f32.gmra.mrb[2].mxu0 %v199_v30  ;;  %567 = vmatmul.mubr.f32.gmra.mrb[2].mxu1 %v203_v31 }
 0x15c   : > { %v559_v32 = vpop.f32.mrb[0].mxu0  ;;  %v565_v33 = vpop.f32.mrb[0].mxu1 }
 0x15d   : > { %v286_v34 = vpop.f32.mrb[1].mxu0  ;;  %v306_v35 = vpop.f32.mrb[1].mxu1 }
 0x15e   : > { %v325_v36 = vadd.f32 %v559_v32, %v286_v34 }
 0x160   : > { %v562_v37 = vpop.f32.mrb[2].mxu0  ;;  %v568_v38 = vpop.f32.mrb[2].mxu1 }
 0x161   : > { %v296_v39 = vpop.f32.mrb[3].mxu0  ;;  %v316_v40 = vpop.f32.mrb[3].mxu1 }
 0x162   : > { %v326_v41 = vadd.f32 %v325_v36, %v296_v39 }
 0x164   : > { %v327_v42 = vadd.f32 %v562_v37, %v326_v41 }
 0x166   : > { %v328_v43 = vadd.f32 %v327_v42, %v306_v35 }
 0x168   : > { %v329_v44 = vadd.f32 %v565_v33, %v328_v43 }
 0x16a   : > { %v330_v45 = vadd.f32 %v329_v44, %v316_v40 }
 0x16c   : > { %v331_v46 = vadd.f32 %v568_v38, %v330_v45 }
 0x16e   : > { %v332_v47 = vrot.slane %v331_v46, 4 }
 0x170   : > { %v333_v48 = vadd.f32 %v332_v47, %v331_v46 }
 0x172   : > { %v334_v49 = vrot.slane %v333_v48, 2 }
 0x174   : > { %v335_v50 = vadd.f32 %v334_v49, %v333_v48 }
 0x176   : > { %v336_v51 = vrot.slane %v335_v50, 1 }
 0x178   : > { %v337_v52 = vadd.f32 %v336_v51, %v335_v50 }
 0x17a   : > { %v338_v53 = vmul.f32 0.015625, %v337_v52 }
 0x17c   : > { %v339_v54 = vsub.f32 %v286_v34, %v338_v53  ;;  %v340_v55 = vsub.f32 %v559_v32, %v338_v53  ;;  %v341_v56 = vsub.f32 %v296_v39, %v338_v53  ;;  %v342_v57 = vsub.f32 %v562_v37, %v338_v53 }
 0x17d   : > { %v343_v58 = vsub.f32 %v306_v35, %v338_v53  ;;  %v344_v59 = vsub.f32 %v565_v33, %v338_v53  ;;  %v345_v60 = vsub.f32 %v316_v40, %v338_v53  ;;  %v346_v61 = vsub.f32 %v568_v38, %v338_v53 }
 0x17e   : > { %v347_v62 = vmul.f32 %v339_v54, %v339_v54  ;;  %v348_v63 = vmul.f32 %v340_v55, %v340_v55  ;;  %v349_v0 = vmul.f32 %v341_v56, %v341_v56  ;;  %v350_v2 = vmul.f32 %v342_v57, %v342_v57 }
 0x17f   : > { %v351_v4 = vmul.f32 %v343_v58, %v343_v58  ;;  %v352_v6 = vmul.f32 %v344_v59, %v344_v59  ;;  %v353_v8 = vmul.f32 %v345_v60, %v345_v60  ;;  %v354_v10 = vmul.f32 %v346_v61, %v346_v61 }
 0x180   : > { %v355_v1 = vadd.f32 %v348_v63, %v347_v62 }
 0x182   : > { %v356_v3 = vadd.f32 %v355_v1, %v349_v0 }
 0x184   : > { %v357_v5 = vadd.f32 %v356_v3, %v350_v2 }
 0x186   : > { %v358_v7 = vadd.f32 %v357_v5, %v351_v4 }
 0x188   : > { %v359_v9 = vadd.f32 %v358_v7, %v352_v6 }
 0x18a   : > { %v360_v11 = vadd.f32 %v359_v9, %v353_v8 }
 0x18c   : > { %v361_v12 = vadd.f32 %v360_v11, %v354_v10 }
 0x18e   : > { %v362_v13 = vrot.slane %v361_v12, 4 }
 0x190   : > { %v363_v14 = vadd.f32 %v362_v13, %v361_v12 }
 0x192   : > { %v364_v15 = vrot.slane %v363_v14, 2 }
 0x194   : > { %v365_v16 = vadd.f32 %v364_v15, %v363_v14 }
 0x196   : > { %v366_v17 = vrot.slane %v365_v16, 1 }
 0x198   : > { %v367_v18 = vadd.f32 %v366_v17, %v365_v16 }
 0x19a   : > { %v369_v19 = vsel %vm368_vm0, %v337_v52, %v367_v18 }
 0x19b   : > { %370 = vst [vmem:[%s194_s18] sm:$0x3] %v369_v19 }
 0x19c   : > { %779 = shalt.err (!%p776_p7)
}
 0x19d   : > { %s780_s6 = scalar_lea.hbm %s1094_s3, 32  ;;  %s784_s8 = scalar_lea.hbm %s1150_s2, 256 }
 0x19e   : > { %p781_p1 = scmp.ne.s32.totalorder %s1094_s3, %s780_s6  ;;  %p785_p5 = scmp.lt.u32.totalorder %s1094_s3, %s1150_s2 }
 0x19f   : > { %p786_p9 = scmp.lt.u32.totalorder %s784_s8, %s780_s6  ;;  %p788_p6 = scmp.lt.u32.totalorder %s780_s6, %s1094_s3 }
 0x1a0   : > { %p782_p2 = pnand %p781_p1, %p998_p11 }
 0x1a1   : > { %p787_p0 = por %p786_p9, %p785_p5 }
 0x1a2   : > { %p783_p4 = pneg %p782_p2 }
 0x1a3   : > { %p789_p8 = por %p788_p6, %p787_p0 }
 0x1a5   : > { %p790_p10 = pnand %p789_p8, %p783_p4 }
 0x1a7   : > { %793 = shalt.err (!%p790_p10)
}
 0x1a8   : > { %623 = dma.vmem_to_hbm [thread:$0]  (%p998_p11), %s1096_s26, 32, %s1094_s3, %s372_s12  }
 0x1a9 PF: > { %p640_p12 = scmp.ge.s32.totalorder %s868_s16, 2  ;;  %s399_s27 = sand.u32 1, %s840_s9  }
 0x1aa   : > { %p1180_p13 = scmp.ne.s32.totalorder %s1165_s22, 0  ;;  %s400_s19 = scalar_lea.sflag [#allocation4], %s399_s27 }
 0x1ac   : > { %p634_p3 = pnand %p640_p12, %p1180_p13 }
 0x1ae   : > { %835 = dma.done.wait (!%p634_p3), %s400_s19, 32  }
 0x1af   : > { %837 = vsyncadd (!%p634_p3), %s400_s19, 4294967264  ;;  %s19_s16 = sadd.s32 1, %s868_s16   ;;  %s1181_s12 = sld [smem:[#allocation11_spill]] }
 0x1b0   : > { %p16_p7 = scmp.ge.s32.totalorder %s19_s16, 10   ;;  %s1182_s14 = sld [smem:[#allocation12_spill]] }
 0x1b1   : > { %s1183_s29 = sld [smem:[#allocation13_spill]]  ;;  %s1184_s9 = smov %s844_s10 }
 0x1b2   : > { %s1185_s10 = smov %s848_s11  ;;  %s1186_s11 = smov %s1015_s7 }
 0x1b3   : > { %s1187_s13 = smov %s864_s15  ;;  %18 = sbr.rel (!%p16_p7) target bundleno = 10 (0xa), region = 77 }
 0x1b7   : > { %s1188_s15 = smov %s1183_s29 }
 0x1ba   :  { %405 = vsyncpa [#allocation3], 1 }
 0x1bb   :  { %407 = vsyncpa [#allocation3 + $0x1], 1 }
 0x1bc   :  { %408 = vsyncpa [#allocation6], 1 }
 0x1bd   :  { %409 = vsyncpa [#allocation4], 1 }
 0x1be   :  { %411 = vsyncpa [#allocation4 + $0x1], 1 }

</bundles_post_ra>
